<compile_context>
chip_gen: v6e
topology: v6e:2x2x1
jax: 0.10.0
libtpu: 0.0.40
codegen_flags: <defaults>
</compile_context>

<pallas_src>
import jax
import jax.numpy as jnp
from jax.experimental import pallas as pl
from jax.experimental.pallas import tpu as pltpu


def _round_up(n: int, m: int) -> int:
    return (n + m - 1) // m * m


# ----------------------------- Pallas kernel --------------------------------
def _discriminator_kernel(x_ref, lab_ref, w1_ref, ep_ref, w2_ref, b2_ref, out_ref):
    # x_ref  : (TB, D)          activation tile (batch on sublanes)
    # lab_ref: (TB, 1) int32    class id per row
    # w1_ref : (D, H)           first-layer weights, data features only
    # ep_ref : (C, H) f32       pre-projected embedding table  E @ W1[D:] + b1
    # w2_ref : (1, H)           second-layer weights (transposed)
    # b2_ref : (1, 1) in SMEM   second-layer bias (scalar)
    # out_ref: (1, TB)          lane-dense output tile (batch on lanes)
    tb = x_ref.shape[0]
    num_classes = ep_ref.shape[0]

    # Layer 1 (data part) on the MXU with f32 accumulation.
    h = jnp.dot(x_ref[...], w1_ref[...], preferred_element_type=jnp.float32)

    # Fused embedding gather + b1: one-hot (TB, C) @ (C, H) on the MXU.
    # Every row gets exactly one hit (padded rows use class 0 and are sliced
    # off in the wrapper), so the folded b1 is added exactly once per row.
    lbl = lab_ref[...]                                            # (TB, 1) int32
    iota = jax.lax.broadcasted_iota(jnp.int32, (tb, num_classes), 1)
    onehot = (lbl == iota).astype(jnp.float32)                    # (TB, C)
    h = h + jnp.dot(onehot, ep_ref[...], preferred_element_type=jnp.float32)

    # LeakyReLU(0.2)
    h = jnp.where(h >= 0.0, h, 0.2 * h)

    # Layer 2: contract the hidden axis of (1, H) x (TB, H) -> (1, TB).
    # The per-row scalar comes out already on the lane axis (unmasked stores).
    y = jax.lax.dot_general(
        w2_ref[...].astype(jnp.float32), h,
        dimension_numbers=(((1,), (1,)), ((), ())),
        preferred_element_type=jnp.float32)
    out_ref[...] = (y + b2_ref[0, 0]).astype(out_ref.dtype)


# ------------------------------ Wrapper --------------------------------------
def _choose_block_b(batch: int) -> int:
    # Roofline-aware tile: big enough to amortize the ~0.35 us per-grid-step
    # overhead, small enough that double-buffered lane-padded x/label tiles plus
    # the (TB, 128-padded) intermediates stay well inside a 32 MiB scoped-VMEM
    # budget on every generation (v7x has only 64 MiB physical VMEM).
    cap = 4096
    bb = min(cap, _round_up(batch, 128))
    if batch > 256:
        # Keep >= 2 grid steps so the "parallel" axis feeds both v7x TensorCores.
        bb = min(bb, _round_up(-(-batch // 2), 128))
    return max(bb, 128)


def discriminator_mlp(x, labels, w1_data, emb_proj_b, w2_row, b2, *, block_b=None):
    """out[b] = w2 . leaky_relu(x[b] @ W1[:D] + (E @ W1[D:] + b1)[labels[b]]) + b2."""
    B, data_dim = x.shape
    hidden = w1_data.shape[1]
    num_classes = emb_proj_b.shape[0]

    if block_b is None:
        block_b = _choose_block_b(B)
    b_pad = _round_up(B, block_b)
    if b_pad != B:
        x = jnp.pad(x, ((0, b_pad - B), (0, 0)))
        labels = jnp.pad(labels, ((0, b_pad - B), (0, 0)))
    num_tiles = b_pad // block_b

    x_bytes = int(x.dtype.itemsize)
    cost = pl.CostEstimate(
        flops=2 * b_pad * hidden * (data_dim + num_classes + 1),
        transcendentals=0,
        bytes_accessed=b_pad * (data_dim * x_bytes + 4 + 4)
        + (data_dim + num_classes + 1) * hidden * 4,
    )

    out = pl.pallas_call(
        _discriminator_kernel,
        out_shape=jax.ShapeDtypeStruct((num_tiles, block_b), jnp.float32),
        grid_spec=pltpu.PrefetchScalarGridSpec(
            num_scalar_prefetch=0,
            grid=(num_tiles,),
            in_specs=[
                pl.BlockSpec((block_b, data_dim), lambda i: (i, 0)),    # x tile
                pl.BlockSpec((block_b, 1), lambda i: (i, 0)),           # label ids
                pl.BlockSpec((data_dim, hidden), lambda i: (0, 0)),     # W1[:D]
                pl.BlockSpec((num_classes, hidden), lambda i: (0, 0)),  # E@W1[D:]+b1
                pl.BlockSpec((1, hidden), lambda i: (0, 0)),            # w2^T
                pl.BlockSpec(memory_space=pltpu.MemorySpace.SMEM),      # b2 scalar
            ],
            out_specs=pl.BlockSpec((1, block_b), lambda i: (i, 0)),     # lane-dense
        ),
        compiler_params=pltpu.CompilerParams(
            dimension_semantics=("parallel",),      # batch tiles across TCs on v7x
            vmem_limit_bytes=32 * 1024 * 1024,      # raise v5e's 16 MiB scoped default
        ),
        cost_estimate=cost,
    )(x, labels, w1_data, emb_proj_b, w2_row, b2)

    # Lane-dense (num_tiles, TB) slab -> (B, 1) column.
    return out.reshape(b_pad, 1)[:B]


# ------------------------------ Module ---------------------------------------
class DiscriminatorPallas:
    def __init__(self, class_size, data_dim, label_dim, key,
                 hidden=40, compute_dtype=jnp.bfloat16):
        k_emb, k_w1, k_b1, k_w2, k_b2 = jax.random.split(key, 5)
        in_dim = data_dim + label_dim
        self.data_dim = data_dim
        self.compute_dtype = compute_dtype

        # Master (f32) parameters, same shapes/semantics as the PyTorch module.
        self.embedding = jax.random.normal(k_emb, (class_size, label_dim), jnp.float32) * 0.1
        self.w1 = jax.random.normal(k_w1, (in_dim, hidden), jnp.float32) * 0.1
        self.b1 = jax.random.normal(k_b1, (1, hidden), jnp.float32) * 0.1
        self.w2 = jax.random.normal(k_w2, (hidden, 1), jnp.float32) * 0.1
        self.b2 = jax.random.normal(k_b2, (1, 1), jnp.float32) * 0.1

        # Kernel-friendly fused parameterization (re-derive if params change):
        #   cat([x, E[label]]) @ W1 + b1 == x @ W1[:D] + (E @ W1[D:] + b1)[label]
        self.w1_data = self.w1[:data_dim].astype(compute_dtype)                     # (D, H)
        self.emb_proj_b = (self.embedding @ self.w1[data_dim:] + self.b1).astype(jnp.float32)  # (C, H)
        self.w2_row = self.w2.T.astype(jnp.float32)                                 # (1, H)

    def __call__(self, inp, label, *, block_b=None):
        x = inp.astype(self.compute_dtype)     # bf16 streaming, f32 accumulation
        lbl = label.astype(jnp.int32)          # (B, 1) class ids
        return discriminator_mlp(x, lbl, self.w1_data, self.emb_proj_b,
                                 self.w2_row, self.b2, block_b=block_b)


# ------------------------------ Reference -------------------------------------
def reference_forward(model, inp, label):
    # Faithful to the PyTorch forward: embed -> squeeze -> concat -> MLP (f32).
    emb = jnp.squeeze(jnp.take(model.embedding, label, axis=0), axis=1)
    x = jnp.concatenate([inp, emb], axis=1)
    h = x @ model.w1 + model.b1
    h = jnp.where(h >= 0.0, h, 0.2 * h)
    return h @ model.w2 + model.b2


if __name__ == "__main__":
    key = jax.random.PRNGKey(0)
    k_model, k_x, k_lbl, k_x2, k_lbl2 = jax.random.split(key, 5)

    class_size = 5
    data_dim = 32     # args.data_dim
    label_dim = 8     # args.label_dim

    # 1) f32 compute, small batch (single padded tile): tight numerical check.
    model_f32 = DiscriminatorPallas(class_size, data_dim, label_dim, k_model,
                                    compute_dtype=jnp.float32)
    batch = 8
    inp = jax.random.normal(k_x, (batch, data_dim), jnp.float32)
    label = jax.random.randint(k_lbl, (batch, 1), 0, class_size, jnp.int32)
    out = jax.block_until_ready(model_f32(inp, label))
    ref = reference_forward(model_f32, inp, label)
    assert out.shape == (batch, 1)
    assert jnp.allclose(out, ref, atol=1e-4, rtol=1e-4), \
        float(jnp.max(jnp.abs(out - ref)))

    # 2) Default bf16 streaming, ragged multi-tile batch (grid > 1).
    model_bf16 = DiscriminatorPallas(class_size, data_dim, label_dim, k_model)
    batch2 = 300
    inp2 = jax.random.normal(k_x2, (batch2, data_dim), jnp.float32)
    label2 = jax.random.randint(k_lbl2, (batch2, 1), 0, class_size, jnp.int32)
    out2 = jax.block_until_ready(model_bf16(inp2, label2))
    ref2 = reference_forward(model_bf16, inp2, label2)
    assert out2.shape == (batch2, 1)
    assert jnp.allclose(out2, ref2, atol=5e-2, rtol=5e-2), \
        float(jnp.max(jnp.abs(out2 - ref2)))

    print("KERNEL_OK")
</pallas_src>

<mosaic_0001>
module attributes {stable_mosaic.version = 11 : i64} {
  func.func @_discriminator_kernel(%arg0: i32, %arg1: memref<128x32xf32, #tpu.memory_space<vmem>>, %arg2: memref<128x1xi32, #tpu.memory_space<vmem>>, %arg3: memref<32x40xf32, #tpu.memory_space<vmem>>, %arg4: memref<5x40xf32, #tpu.memory_space<vmem>>, %arg5: memref<1x40xf32, #tpu.memory_space<vmem>>, %arg6: memref<1x1xf32, #tpu.memory_space<smem>>, %arg7: memref<1x128xf32, #tpu.memory_space<vmem>>) attributes {dimension_semantics = [#tpu.dimension_semantics<parallel>], iteration_bounds = array<i64: 1>, scalar_prefetch = 0 : i64, scratch_operands = 0 : i64, tpu.core_type = #tpu.core_type<tc>, window_params = [{transform_indices = @transform_0, window_bounds = array<i64: 128, 32>}, {transform_indices = @transform_1, window_bounds = array<i64: 128, 1>}, {pipeline_mode = #tpu.pipeline_mode<synchronous>, transform_indices = @transform_2, window_bounds = array<i64: 32, 40>}, {pipeline_mode = #tpu.pipeline_mode<synchronous>, transform_indices = @transform_3, window_bounds = array<i64: 5, 40>}, {pipeline_mode = #tpu.pipeline_mode<synchronous>, transform_indices = @transform_4, window_bounds = array<i64: 1, 40>}, {transform_indices = @transform_5, window_bounds = array<i64: 1, 1>}, {transform_indices = @transform_6, window_bounds = array<i64: 1, 128>}]} {
    %c0 = arith.constant 0 : index
    %c0_0 = arith.constant 0 : index
    %0 = vector.load %arg1[%c0, %c0_0] : memref<128x32xf32, #tpu.memory_space<vmem>>, vector<128x32xf32>
    %c0_1 = arith.constant 0 : index
    %c0_2 = arith.constant 0 : index
    %1 = vector.load %arg3[%c0_1, %c0_2] : memref<32x40xf32, #tpu.memory_space<vmem>>, vector<32x40xf32>
    %cst = arith.constant dense<0.000000e+00> : vector<128x40xf32>
    %2 = tpu.matmul %0, %1, %cst {dimension_numbers = #tpu.dot_dimension_numbers<[1], [0], [0], [1], [0, 0, 1, 1], [], []>} : vector<128x32xf32>, vector<32x40xf32>, vector<128x40xf32> -> vector<128x40xf32>
    %c0_3 = arith.constant 0 : index
    %c0_4 = arith.constant 0 : index
    %3 = vector.load %arg2[%c0_3, %c0_4] : memref<128x1xi32, #tpu.memory_space<vmem>>, vector<128x1xi32>
    %4 = tpu.iota {dimensions = array<i32: 1>} : vector<128x5xi32>
    %5 = vector.broadcast %3 : vector<128x1xi32> to vector<128x5xi32>
    %6 = arith.cmpi eq, %5, %4 : vector<128x5xi32>
    %7 = arith.extui %6 : vector<128x5xi1> to vector<128x5xi32>
    %8 = arith.sitofp %7 : vector<128x5xi32> to vector<128x5xf32>
    %c0_5 = arith.constant 0 : index
    %c0_6 = arith.constant 0 : index
    %9 = vector.load %arg4[%c0_5, %c0_6] : memref<5x40xf32, #tpu.memory_space<vmem>>, vector<5x40xf32>
    %cst_7 = arith.constant dense<0.000000e+00> : vector<128x40xf32>
    %10 = tpu.matmul %8, %9, %cst_7 {dimension_numbers = #tpu.dot_dimension_numbers<[1], [0], [0], [1], [0, 0, 1, 1], [], []>} : vector<128x5xf32>, vector<5x40xf32>, vector<128x40xf32> -> vector<128x40xf32>
    %11 = arith.addf %2, %10 : vector<128x40xf32>
    %cst_8 = arith.constant 0.000000e+00 : f32
    %12 = vector.broadcast %cst_8 : f32 to vector<128x40xf32>
    %13 = arith.cmpf oge, %11, %12 : vector<128x40xf32>
    %cst_9 = arith.constant 2.000000e-01 : f32
    %14 = vector.broadcast %cst_9 : f32 to vector<128x40xf32>
    %15 = arith.mulf %14, %11 : vector<128x40xf32>
    %16 = arith.select %13, %11, %15 : vector<128x40xi1>, vector<128x40xf32>
    %c0_10 = arith.constant 0 : index
    %c0_11 = arith.constant 0 : index
    %17 = vector.load %arg5[%c0_10, %c0_11] : memref<1x40xf32, #tpu.memory_space<vmem>>, vector<1x40xf32>
    %cst_12 = arith.constant dense<0.000000e+00> : vector<1x128xf32>
    %18 = tpu.matmul %17, %16, %cst_12 {dimension_numbers = #tpu.dot_dimension_numbers<[1], [1], [0], [0], [0, 0, 1, 0], [], []>} : vector<1x40xf32>, vector<128x40xf32>, vector<1x128xf32> -> vector<1x128xf32>
    %c0_13 = arith.constant 0 : index
    %c0_14 = arith.constant 0 : index
    %19 = memref.load %arg6[%c0_13, %c0_14] : memref<1x1xf32, #tpu.memory_space<smem>>
    %20 = vector.broadcast %19 : f32 to vector<1x128xf32>
    %21 = arith.addf %18, %20 : vector<1x128xf32>
    %c0_15 = arith.constant 0 : index
    %c0_16 = arith.constant 0 : index
    %22 = vector.load %arg7[%c0_15, %c0_16] : memref<1x128xf32, #tpu.memory_space<vmem>>, vector<1x128xf32>
    tpu.vector_store %arg7[%c0_15, %c0_16], %21 {strides = array<i32>} : memref<1x128xf32, #tpu.memory_space<vmem>>, vector<1x128xf32>,
    return
  }
  func.func @transform_0(%arg0: i32) -> (i32, i32) {
    %c0_i32 = arith.constant 0 : i32
    %c0_i32_0 = arith.constant 0 : i32
    return %arg0, %c0_i32 : i32, i32
  }
  func.func @transform_1(%arg0: i32) -> (i32, i32) {
    %c0_i32 = arith.constant 0 : i32
    %c0_i32_0 = arith.constant 0 : i32
    return %arg0, %c0_i32 : i32, i32
  }
  func.func @transform_2(%arg0: i32) -> (i32, i32) {
    %c0_i32 = arith.constant 0 : i32
    %c0_i32_0 = arith.constant 0 : i32
    %c0_i32_1 = arith.constant 0 : i32
    return %c0_i32, %c0_i32_0 : i32, i32
  }
  func.func @transform_3(%arg0: i32) -> (i32, i32) {
    %c0_i32 = arith.constant 0 : i32
    %c0_i32_0 = arith.constant 0 : i32
    %c0_i32_1 = arith.constant 0 : i32
    return %c0_i32, %c0_i32_0 : i32, i32
  }
  func.func @transform_4(%arg0: i32) -> (i32, i32) {
    %c0_i32 = arith.constant 0 : i32
    %c0_i32_0 = arith.constant 0 : i32
    %c0_i32_1 = arith.constant 0 : i32
    return %c0_i32, %c0_i32_0 : i32, i32
  }
  func.func @transform_5(%arg0: i32) -> (i32, i32) {
    %c0_i32 = arith.constant 0 : i32
    %c0_i32_0 = arith.constant 0 : i32
    %c0_i32_1 = arith.constant 0 : i32
    return %c0_i32, %c0_i32_0 : i32, i32
  }
  func.func @transform_6(%arg0: i32) -> (i32, i32) {
    %c0_i32 = arith.constant 0 : i32
    %c0_i32_0 = arith.constant 0 : i32
    return %arg0, %c0_i32 : i32, i32
  }
}

</mosaic_0001>

<bundles_post_ra>
// kernel: tpu_custom_call.1
= control target key start
LH: loop header
LB: loop body
LE: loop exit
PB: predicated region body
PF: predicated region fallthrough
CT: control target
= control target key end

     0   :  { %v981_v2 = vmov 0   ;;  %v982_v5 = vmov 0.0   ;;  %vm209_vm0 = vcmask 1044480   ;;  %s1281_s0 = inlined_call_operand.vmem [shape: f32[128,32], index: 0, kind: input, shape index: {}]   ;;  %s1282_s1 = inlined_call_operand.vmem [shape: s32[128,1], index: 1, kind: input, shape index: {}]   ;;  %s1283_s2 = inlined_call_operand.vmem [shape: f32[32,40], index: 2, kind: input, shape index: {}]   ;;  %s1284_s3 = inlined_call_operand.vmem [shape: f32[5,40], index: 3, kind: input, shape index: {}]   ;;  %s1285_s4 = inlined_call_operand.vmem [shape: f32[1,40], index: 4, kind: input, shape index: {}]   ;;  %s1286_s5 = inlined_call_operand.<no memory space> [shape: f32[1,1], index: 5, kind: input, shape index: {}]   ;;  %s1287_s6 = inlined_call_operand.hbm [shape: f32[1,128], index: 6, kind: output, shape index: {}]  }
   0x1   :  { %v47_v0 = vld [vmem:[%s1282_s1 + $0x10] sm:$0xff]  ;;  %v45_v1 = vld [vmem:[%s1282_s1] sm:$0xff]  ;;  %958 = vset.pattern.permute.xlu1 %v981_v2  ;;  %957 = vset.pattern.permute.xlu0 %v981_v2  ;;  %v48_v3 = vld [vmem:[%s1282_s1 + $0x18] sm:$0xff] }
   0x2   :  { %70 = vperm.xlu1 %958, %v47_v0   ;;  %64 = vperm.xlu0 %957, %v45_v1   ;;  %v46_v4 = vld [vmem:[%s1282_s1 + $0x8] sm:$0xff]  ;;  %v159_v6 = vld [vmem:[%s1284_s3] sm:$0x1f]  ;;  %v44_v7 = vld [vmem:[%s1283_s2 + $0x18] sm:$0xff] }
   0x3   :  { %918 = vmatprep.subr.mxu0 %v982_v5 }
   0x6   :  { %73 = vperm.xlu1 %958, %v48_v3   ;;  %67 = vperm.xlu0 %957, %v46_v4  }
   0x7   :  { %12 = vsyncpa [#allocation4], 0  ;;  %v50_v8 = vld [vmem:[%s1282_s1 + $0x28] sm:$0xff]  ;;  %v49_v9 = vld [vmem:[%s1282_s1 + $0x20] sm:$0xff]  ;;  %860 = vmatprep.subr.msk.mxu1 %vm209_vm0, %v159_v6  ;;  %v61_v20 = vlaneseq  ;;  %vm160_vm1 = vcmask 39936   ;;  %s984_s19 = smov [#allocation3]  }
   0x8   :  { %861 = vmatpush3.msk.msra.mxu1 %vm209_vm0, %v159_v6  ;;  %v52_v10 = vld [vmem:[%s1282_s1 + $0x38] sm:$0xff]  ;;  %v51_v11 = vld [vmem:[%s1282_s1 + $0x30] sm:$0xff]  ;;  %v54_v12 = vld [vmem:[%s1282_s1 + $0x48] sm:$0xff]  ;;  %s732_s20 = sshll.u32 %s984_s19, 4  ;;  %s733_s20 = int_to_ptr.vmem [resolvable:$true] %s732_s20 }
   0x9   :  { %886 = vmatprep.subr.mxu1 %v44_v7  ;;  %v53_v13 = vld [vmem:[%s1282_s1 + $0x40] sm:$0xff]  ;;  %v56_v14 = vld [vmem:[%s1282_s1 + $0x58] sm:$0xff]  ;;  %v55_v15 = vld [vmem:[%s1282_s1 + $0x50] sm:$0xff]  ;;  %v1075_v21 = vand.u32 127, %v61_v20  ;;  %s959_s21 = scalar_lea.vmem %s733_s20, 16  ;;  %s963_s22 = scalar_lea.vmem %s733_s20, 32 }
   0xa   :  { %79 = vperm.xlu1 %958, %v50_v8   ;;  %76 = vperm.xlu0 %957, %v49_v9   ;;  %v58_v16 = vld [vmem:[%s1282_s1 + $0x68] sm:$0xff]  ;;  %v57_v17 = vld [vmem:[%s1282_s1 + $0x60] sm:$0xff]  ;;  %v60_v18 = vld [vmem:[%s1282_s1 + $0x78] sm:$0xff]  ;;  %p960_p0 = scmp.ne.s32.totalorder %s733_s20, %s959_s21  ;;  %p964_p1 = scmp.lt.s32.totalorder %s733_s20, %s733_s20 }
   0xb   :  { %v59_v19 = vld [vmem:[%s1282_s1 + $0x70] sm:$0xff]  ;;  %v42_v32 = vld [vmem:[%s1283_s2 + $0x8] sm:$0xff]  ;;  %v41_v35 = vld [vmem:[%s1283_s2] sm:$0xff]  ;;  %p965_p2 = scmp.lt.s32.totalorder %s963_s22, %s959_s21 }
   0xc   :  { %v43_v29 = vld [vmem:[%s1283_s2 + $0x10] sm:$0xff]  ;;  %v25_v56 = vld [vmem:[%s1281_s0] sm:$0xff]  ;;  %v26_v58 = vld [vmem:[%s1281_s0 + $0x8] sm:$0xff] }
   0xd   :  { %v27_v59 = vld [vmem:[%s1281_s0 + $0x10] sm:$0xff]  ;;  %v28_v60 = vld [vmem:[%s1281_s0 + $0x18] sm:$0xff]  ;;  %v29_v61 = vld [vmem:[%s1281_s0 + $0x20] sm:$0xff]  ;;  %p966_p3 = por %p965_p2, %p964_p1 }
   0xe   :  { %85 = vperm.xlu1 %958, %v52_v10   ;;  %82 = vperm.xlu0 %957, %v51_v11   ;;  %v30_v62 = vld [vmem:[%s1281_s0 + $0x28] sm:$0xff]  ;;  %v31_v63 = vld [vmem:[%s1281_s0 + $0x30] sm:$0xff]  ;;  %v32_v0 = vld [vmem:[%s1281_s0 + $0x38] sm:$0xff] }
   0xf   :  { %v33_v1 = vld [vmem:[%s1281_s0 + $0x40] sm:$0xff]  ;;  %v34_v2 = vld [vmem:[%s1281_s0 + $0x48] sm:$0xff]  ;;  %v35_v3 = vld [vmem:[%s1281_s0 + $0x50] sm:$0xff]  ;;  %p967_p4 = pnand %p966_p3, %p960_p0 }
  0x10   :  { %v36_v4 = vld [vmem:[%s1281_s0 + $0x58] sm:$0xff]  ;;  %v37_v6 = vld [vmem:[%s1281_s0 + $0x60] sm:$0xff]  ;;  %v39_v8 = vld [vmem:[%s1281_s0 + $0x70] sm:$0xff] }
  0x11   :  { %v40_v9 = vld [vmem:[%s1281_s0 + $0x78] sm:$0xff] }
  0x12   :  { %91 = vperm.xlu1 %958, %v54_v12   ;;  %88 = vperm.xlu0 %957, %v53_v13  }
  0x16   :  { %97 = vperm.xlu1 %958, %v56_v14   ;;  %94 = vperm.xlu0 %957, %v55_v15  }
  0x1a   :  { %103 = vperm.xlu1 %958, %v58_v16   ;;  %100 = vperm.xlu0 %957, %v57_v17  }
  0x1e   :  { %109 = vperm.xlu1 %958, %v60_v18   ;;  %106 = vperm.xlu0 %957, %v59_v19  }
  0x7d   :  { %v71_v22 = vpop.permute.xlu1 %70  ;;  %v65_v23 = vpop.permute.xlu0 %64 }
  0x7e   :  { %vm111_vm2 = vcmp.eq.s32.totalorder %v65_v23, %v1075_v21  ;;  %vm113_vm3 = vcmp.eq.s32.totalorder %v71_v22, %v1075_v21 }
  0x7f   :  { %v740_v24 = vsel %vm111_vm2, 1.0, %v982_v5  ;;  %v742_v27 = vsel %vm113_vm3, 1.0, %v982_v5  ;;  %vm358_vm3 = vcmask 261120  }
  0x80   :  { %862 = vmatprep.mubr.msk.f32.mxu1 %vm160_vm1, %v740_v24 }
  0x81   :  { %v74_v25 = vpop.permute.xlu1 %73  ;;  %v68_v26 = vpop.permute.xlu0 %67 }
  0x82   :  { %vm112_vm4 = vcmp.eq.s32.totalorder %v68_v26, %v1075_v21  ;;  %vm114_vm5 = vcmp.eq.s32.totalorder %v74_v25, %v1075_v21 }
  0x83   :  { %v741_v28 = vsel %vm112_vm4, 1.0, %v982_v5  ;;  %v743_v33 = vsel %vm114_vm5, 1.0, %v982_v5  ;;  %vm603_vm5 = vcmask 326656  }
  0x84   :  { %863 = vmatmul.mubr.msk.f32.vlgmr.msra.gmra.mxu1 %vm160_vm1, %v741_v28 }
  0x85   :  { %887 = vmatpush3.msra.mxu1 %v44_v7  ;;  %v80_v30 = vpop.permute.xlu1 %79  ;;  %865 = vmatprep.mubr.msk.f32.mxu1 %vm160_vm1, %v742_v27  ;;  %v77_v31 = vpop.permute.xlu0 %76  ;;  %v38_v7 = vld [vmem:[%s1281_s0 + $0x68] sm:$0xff] }
  0x86   :  { %vm115_vm6 = vcmp.eq.s32.totalorder %v77_v31, %v1075_v21  ;;  %888 = vmatprep.subr.mxu1 %v43_v29  ;;  %vm116_vm7 = vcmp.eq.s32.totalorder %v80_v30, %v1075_v21 }
  0x87   :  { %v744_v34 = vsel %vm115_vm6, 1.0, %v982_v5  ;;  %889 = vmatpush3.msra.mxu1 %v43_v29  ;;  %v745_v38 = vsel %vm116_vm7, 1.0, %v982_v5 }
  0x88   :  { %866 = vmatmul.mubr.msk.f32.gmra.mxu1 %vm160_vm1, %v743_v33  ;;  %890 = vmatprep.subr.mxu1 %v42_v32 }
  0x89   :  { %v86_v36 = vpop.permute.xlu1 %85  ;;  %868 = vmatprep.mubr.msk.f32.mxu1 %vm160_vm1, %v744_v34  ;;  %v83_v37 = vpop.permute.xlu0 %82  ;;  %891 = vmatpush3.msra.mxu1 %v42_v32 }
  0x8a   :  { %vm117_vm8 = vcmp.eq.s32.totalorder %v83_v37, %v1075_v21  ;;  %892 = vmatprep.subr.mxu1 %v41_v35  ;;  %vm118_vm9 = vcmp.eq.s32.totalorder %v86_v36, %v1075_v21 }
  0x8b   :  { %v746_v39 = vsel %vm117_vm8, 1.0, %v982_v5  ;;  %893 = vmatpush3.msra.mxu1 %v41_v35  ;;  %v747_v42 = vsel %vm118_vm9, 1.0, %v982_v5 }
  0x8c   :  { %869 = vmatmul.mubr.msk.f32.gmra.mxu1 %vm160_vm1, %v745_v38 }
  0x8d   :  { %v92_v40 = vpop.permute.xlu1 %91  ;;  %871 = vmatprep.mubr.msk.f32.mxu1 %vm160_vm1, %v746_v39  ;;  %v89_v41 = vpop.permute.xlu0 %88 }
  0x8e   :  { %vm119_vm10 = vcmp.eq.s32.totalorder %v89_v41, %v1075_v21  ;;  %vm120_vm11 = vcmp.eq.s32.totalorder %v92_v40, %v1075_v21 }
  0x8f   :  { %v748_v43 = vsel %vm119_vm10, 1.0, %v982_v5  ;;  %v749_v46 = vsel %vm120_vm11, 1.0, %v982_v5 }
  0x90   :  { %872 = vmatmul.mubr.msk.f32.gmra.mxu1 %vm160_vm1, %v747_v42 }
  0x91   :  { %v98_v44 = vpop.permute.xlu1 %97  ;;  %874 = vmatprep.mubr.msk.f32.mxu1 %vm160_vm1, %v748_v43  ;;  %v95_v45 = vpop.permute.xlu0 %94 }
  0x92   :  { %vm121_vm12 = vcmp.eq.s32.totalorder %v95_v45, %v1075_v21  ;;  %vm122_vm13 = vcmp.eq.s32.totalorder %v98_v44, %v1075_v21 }
  0x93   :  { %v750_v47 = vsel %vm121_vm12, 1.0, %v982_v5  ;;  %v751_v50 = vsel %vm122_vm13, 1.0, %v982_v5 }
  0x94   :  { %875 = vmatmul.mubr.msk.f32.gmra.mxu1 %vm160_vm1, %v749_v46 }
  0x95   :  { %v104_v48 = vpop.permute.xlu1 %103  ;;  %877 = vmatprep.mubr.msk.f32.mxu1 %vm160_vm1, %v750_v47  ;;  %v101_v49 = vpop.permute.xlu0 %100 }
  0x96   :  { %vm123_vm14 = vcmp.eq.s32.totalorder %v101_v49, %v1075_v21  ;;  %vm124_vm15 = vcmp.eq.s32.totalorder %v104_v48, %v1075_v21 }
  0x97   :  { %v752_v51 = vsel %vm123_vm14, 1.0, %v982_v5  ;;  %v753_v54 = vsel %vm124_vm15, 1.0, %v982_v5 }
  0x98   :  { %878 = vmatmul.mubr.msk.f32.gmra.mxu1 %vm160_vm1, %v751_v50 }
  0x99   :  { %v110_v52 = vpop.permute.xlu1 %109  ;;  %880 = vmatprep.mubr.msk.f32.mxu1 %vm160_vm1, %v752_v51  ;;  %v107_v53 = vpop.permute.xlu0 %106 }
  0x9a   :  { %vm125_vm0 = vcmp.eq.s32.totalorder %v107_v53, %v1075_v21  ;;  %vm126_vm2 = vcmp.eq.s32.totalorder %v110_v52, %v1075_v21 }
  0x9b   :  { %v754_v55 = vsel %vm125_vm0, 1.0, %v982_v5  ;;  %v755_v57 = vsel %vm126_vm2, 1.0, %v982_v5 }
  0x9c   :  { %881 = vmatmul.mubr.msk.f32.gmra.mxu1 %vm160_vm1, %v753_v54 }
  0x9d   :  { %883 = vmatprep.mubr.msk.f32.mxu1 %vm160_vm1, %v754_v55 }
  0xa0   :  { %884 = vmatmul.mubr.msk.f32.gmra.mxu1 %vm160_vm1, %v755_v57  ;;  %vm983_vm1 = vmmov 0  }
  0xa1   :  { %894 = vmatprep.mubr.msk.f32.mxu1 %vm358_vm3, %v25_v56  ;;  %950 = vmatprep.mubr.msk.f32.mxu0 %vm983_vm1, %v982_v5 }
  0xa4   :  { %895 = vmatmul.mubr.msk.f32.vlgmr.msra.gmra.mxu1 %vm358_vm3, %v26_v58 }
  0xa5   :  { %897 = vmatprep.mubr.msk.f32.mxu1 %vm358_vm3, %v27_v59 }
  0xa8   :  { %898 = vmatmul.mubr.msk.f32.gmra.mxu1 %vm358_vm3, %v28_v60 }
  0xa9   :  { %900 = vmatprep.mubr.msk.f32.mxu1 %vm358_vm3, %v29_v61 }
  0xac   :  { %901 = vmatmul.mubr.msk.f32.gmra.mxu1 %vm358_vm3, %v30_v62 }
  0xad   :  { %903 = vmatprep.mubr.msk.f32.mxu1 %vm358_vm3, %v31_v63 }
  0xb0   :  { %904 = vmatmul.mubr.msk.f32.gmra.mxu1 %vm358_vm3, %v32_v0 }
  0xb1   :  { %906 = vmatprep.mubr.msk.f32.mxu1 %vm358_vm3, %v33_v1 }
  0xb4   :  { %907 = vmatmul.mubr.msk.f32.gmra.mxu1 %vm358_vm3, %v34_v2 }
  0xb5   :  { %909 = vmatprep.mubr.msk.f32.mxu1 %vm358_vm3, %v35_v3 }
  0xb8   :  { %910 = vmatmul.mubr.msk.f32.gmra.mxu1 %vm358_vm3, %v36_v4 }
  0xb9   :  { %912 = vmatprep.mubr.msk.f32.mxu1 %vm358_vm3, %v37_v6 }
  0xbc   :  { %913 = vmatmul.mubr.msk.f32.gmra.mxu1 %vm358_vm3, %v38_v7 }
  0xbd   :  { %915 = vmatprep.mubr.msk.f32.mxu1 %vm358_vm3, %v39_v8 }
  0xc0   :  { %916 = vmatmul.mubr.msk.f32.gmra.mxu1 %vm358_vm3, %v40_v9 }
 0x144   :  { %v864_v10 = vpop.f32.mrf.mxu1 }
 0x146   :  { %v279_v11 = vpop.f32.mrf.mxu1 }
 0x148   :  { %v867_v12 = vpop.f32.mrf.mxu1 }
 0x14a   :  { %v289_v13 = vpop.f32.mrf.mxu1 }
 0x14c   :  { %v1199_v14 = vpop.f32.mrf.mxu1 }
 0x14e   :  { %v1201_v15 = vpop.f32.mrf.mxu1 }
 0x150   :  { %v1203_v16 = vpop.f32.mrf.mxu1 }
 0x152   :  { %v1205_v17 = vpop.f32.mrf.mxu1 }
 0x154   :  { %v876_v18 = vpop.f32.mrf.mxu1 }
 0x156   :  { %v1207_v19 = vpop.f32.mrf.mxu1 }
 0x158   :  { %v879_v20 = vpop.f32.mrf.mxu1 }
 0x15a   :  { %v329_v21 = vpop.f32.mrf.mxu1 }
 0x15c   :  { %v882_v22 = vpop.f32.mrf.mxu1 }
 0x15e   :  { %v339_v23 = vpop.f32.mrf.mxu1 }
 0x160   :  { %v885_v24 = vpop.f32.mrf.mxu1 }
 0x162   :  { %v349_v25 = vpop.f32.mrf.mxu1 }
 0x164   :  { %v896_v26 = vpop.f32.mrf.mxu1 }
 0x165   :  { %v1209_v27 = vadd.f32 %v896_v26, %v864_v10 }
 0x166   :  { %v473_v28 = vpop.f32.mrf.mxu1 }
 0x167   :  { %v1211_v29 = vadd.f32 %v473_v28, %v279_v11  ;;  %vm553_vm1 = vcmp.ge.f32.partialorder %v1209_v27, 0.0  ;;  %v600_v28 = vld [vmem:[%s1285_s4] sm:$0x1] }
 0x168   :  { %v899_v30 = vpop.f32.mrf.mxu1 }
 0x169   :  { %v1213_v31 = vadd.f32 %v899_v30, %v867_v12 }
 0x16a   :  { %v483_v32 = vpop.f32.mrf.mxu1 }
 0x16b   :  { %v1215_v33 = vadd.f32 %v483_v32, %v289_v13  ;;  %vm555_vm2 = vcmp.ge.f32.partialorder %v1213_v31, 0.0 }
 0x16c   :  { %v1217_v34 = vpop.f32.mrf.mxu1 }
 0x16d   :  { %v499_v10 = vadd.f32 %v1217_v34, %v1199_v14  ;;  %v571_v14 = vmul.f32 0.2, %v1213_v31  ;;  %vm554_vm3 = vcmp.ge.f32.partialorder %v1215_v33, 0.0 }
 0x16e   :  { %v1219_v35 = vpop.f32.mrf.mxu1 }
 0x16f   :  { %v573_v13 = vmul.f32 0.2, %v499_v10  ;;  %vm557_vm15 = vcmp.ge.f32.partialorder %v499_v10, 0.0 }
 0x170   :  { %v905_v36 = vpop.f32.mrf.mxu1 }
 0x171   :  { %v509_v3 = vadd.f32 %v905_v36, %v1203_v16  ;;  %v494_v16 = vadd.f32 %v1219_v35, %v1201_v15  ;;  %v570_v15 = vmul.f32 0.2, %v1215_v33 }
 0x172   :  { %v503_v37 = vpop.f32.mrf.mxu1 }
 0x173   :  { %v575_v7 = vmul.f32 0.2, %v509_v3  ;;  %v504_v8 = vadd.f32 %v503_v37, %v1205_v17  ;;  %vm559_vm13 = vcmp.ge.f32.partialorder %v509_v3, 0.0  ;;  %vm556_vm0 = vcmp.ge.f32.partialorder %v494_v16, 0.0 }
 0x174   :  { %v908_v38 = vpop.f32.mrf.mxu1 }
 0x175   :  { %v519_v61 = vadd.f32 %v908_v38, %v876_v18  ;;  %v574_v11 = vmul.f32 0.2, %v504_v8  ;;  %v591_v12 = vsel %vm559_vm13, %v509_v3, %v575_v7  ;;  %vm558_vm14 = vcmp.ge.f32.partialorder %v504_v8, 0.0 }
 0x176   :  { %v513_v39 = vpop.f32.mrf.mxu1  ;;  %v572_v18 = vmul.f32 0.2, %v494_v16 }
 0x177   :  { %v577_v0 = vmul.f32 0.2, %v519_v61  ;;  %v514_v1 = vadd.f32 %v513_v39, %v1207_v19  ;;  %vm561_vm11 = vcmp.ge.f32.partialorder %v519_v61, 0.0  ;;  %v590_v17 = vsel %vm558_vm14, %v504_v8, %v574_v11 }
 0x178   :  { %v911_v40 = vpop.f32.mrf.mxu1  ;;  %v589_v19 = vsel %vm557_vm15, %v499_v10, %v573_v13 }
 0x179   :  { %v529_v55 = vadd.f32 %v911_v40, %v879_v20  ;;  %v576_v4 = vmul.f32 0.2, %v514_v1  ;;  %v593_v6 = vsel %vm561_vm11, %v519_v61, %v577_v0  ;;  %vm560_vm12 = vcmp.ge.f32.partialorder %v514_v1, 0.0 }
 0x17a   :  { %v523_v41 = vpop.f32.mrf.mxu1  ;;  %v588_v20 = vsel %vm556_vm0, %v494_v16, %v572_v18 }
 0x17b   :  { %v579_v58 = vmul.f32 0.2, %v529_v55  ;;  %v524_v59 = vadd.f32 %v523_v41, %v329_v21  ;;  %vm563_vm9 = vcmp.ge.f32.partialorder %v529_v55, 0.0  ;;  %v592_v9 = vsel %vm560_vm12, %v514_v1, %v576_v4 }
 0x17c   :  { %v914_v42 = vpop.f32.mrf.mxu1  ;;  %v587_v21 = vsel %vm555_vm2, %v1213_v31, %v571_v14 }
 0x17d   :  { %v539_v49 = vadd.f32 %v914_v42, %v882_v22  ;;  %v578_v62 = vmul.f32 0.2, %v524_v59  ;;  %v595_v63 = vsel %vm563_vm9, %v529_v55, %v579_v58  ;;  %vm562_vm10 = vcmp.ge.f32.partialorder %v524_v59, 0.0 }
 0x17e   :  { %v533_v43 = vpop.f32.mrf.mxu1  ;;  %v569_v22 = vmul.f32 0.2, %v1209_v27 }
 0x17f   :  { %v581_v52 = vmul.f32 0.2, %v539_v49  ;;  %v534_v53 = vadd.f32 %v533_v43, %v339_v23  ;;  %vm565_vm7 = vcmp.ge.f32.partialorder %v539_v49, 0.0  ;;  %v594_v2 = vsel %vm562_vm10, %v524_v59, %v578_v62 }
 0x180   :  { %v917_v44 = vpop.f32.mrf.mxu1  ;;  %v586_v23 = vsel %vm554_vm3, %v1215_v33, %v570_v15 }
 0x181   :  { %v549_v45 = vadd.f32 %v917_v44, %v885_v24  ;;  %v580_v56 = vmul.f32 0.2, %v534_v53  ;;  %v597_v57 = vsel %vm565_vm7, %v539_v49, %v581_v52  ;;  %vm564_vm8 = vcmp.ge.f32.partialorder %v534_v53, 0.0 }
 0x182   :  { %v543_v46 = vpop.f32.mrf.mxu1  ;;  %v568_v24 = vmul.f32 0.2, %v1211_v29 }
 0x183   :  { %v583_v47 = vmul.f32 0.2, %v549_v45  ;;  %v544_v48 = vadd.f32 %v543_v46, %v349_v25  ;;  %vm567_vm4 = vcmp.ge.f32.partialorder %v549_v45, 0.0  ;;  %v596_v60 = vsel %vm564_vm8, %v534_v53, %v580_v56 }
 0x184   :  { %v585_v25 = vsel %vm553_vm1, %v1209_v27, %v569_v22  ;;  %v602_v27 = vstv %s1286_s5 }
 0x185   :  { %v582_v50 = vmul.f32 0.2, %v544_v48  ;;  %v599_v51 = vsel %vm567_vm4, %v549_v45, %v583_v47  ;;  %vm566_vm6 = vcmp.ge.f32.partialorder %v544_v48, 0.0  ;;  %vm552_vm4 = vcmp.ge.f32.partialorder %v1211_v29, 0.0 }
 0x186   :  { %919 = vmatpush3.xpose.msk.msra.mxu0 %vm603_vm5, %v599_v51  ;;  %v584_v26 = vsel %vm552_vm4, %v1211_v29, %v568_v24 }
 0x187   :  { %920 = vmatprep.subr.mxu0 %v982_v5  ;;  %v598_v54 = vsel %vm566_vm6, %v544_v48, %v582_v50 }
 0x18a   :  { %921 = vmatpush3.xpose.msk.msra.mxu0 %vm603_vm5, %v598_v54 }
 0x18b   :  { %922 = vmatprep.subr.mxu0 %v982_v5 }
 0x18e   :  { %923 = vmatpush3.xpose.msk.msra.mxu0 %vm603_vm5, %v597_v57 }
 0x18f   :  { %924 = vmatprep.subr.mxu0 %v982_v5 }
 0x192   :  { %925 = vmatpush3.xpose.msk.msra.mxu0 %vm603_vm5, %v596_v60 }
 0x193   :  { %926 = vmatprep.subr.mxu0 %v982_v5 }
 0x196   :  { %927 = vmatpush3.xpose.msk.msra.mxu0 %vm603_vm5, %v595_v63 }
 0x197   :  { %928 = vmatprep.subr.mxu0 %v982_v5 }
 0x19a   :  { %929 = vmatpush3.xpose.msk.msra.mxu0 %vm603_vm5, %v594_v2 }
 0x19b   :  { %930 = vmatprep.subr.mxu0 %v982_v5 }
 0x19e   :  { %931 = vmatpush3.xpose.msk.msra.mxu0 %vm603_vm5, %v593_v6 }
 0x19f   :  { %932 = vmatprep.subr.mxu0 %v982_v5 }
 0x1a2   :  { %933 = vmatpush3.xpose.msk.msra.mxu0 %vm603_vm5, %v592_v9 }
 0x1a3   :  { %934 = vmatprep.subr.mxu0 %v982_v5 }
 0x1a6   :  { %935 = vmatpush3.xpose.msk.msra.mxu0 %vm603_vm5, %v591_v12 }
 0x1a7   :  { %936 = vmatprep.subr.mxu0 %v982_v5 }
 0x1aa   :  { %937 = vmatpush3.xpose.msk.msra.mxu0 %vm603_vm5, %v590_v17 }
 0x1ab   :  { %938 = vmatprep.subr.mxu0 %v982_v5 }
 0x1ae   :  { %939 = vmatpush3.xpose.msk.msra.mxu0 %vm603_vm5, %v589_v19 }
 0x1af   :  { %940 = vmatprep.subr.mxu0 %v982_v5 }
 0x1b2   :  { %941 = vmatpush3.xpose.msk.msra.mxu0 %vm603_vm5, %v588_v20 }
 0x1b3   :  { %942 = vmatprep.subr.mxu0 %v982_v5 }
 0x1b6   :  { %943 = vmatpush3.xpose.msk.msra.mxu0 %vm603_vm5, %v587_v21 }
 0x1b7   :  { %944 = vmatprep.subr.mxu0 %v982_v5 }
 0x1ba   :  { %945 = vmatpush3.xpose.msk.msra.mxu0 %vm603_vm5, %v586_v23 }
 0x1bb   :  { %946 = vmatprep.subr.mxu0 %v982_v5 }
 0x1be   :  { %947 = vmatpush3.xpose.msk.msra.mxu0 %vm603_vm5, %v585_v25 }
 0x1bf   :  { %948 = vmatprep.subr.mxu0 %v982_v5 }
 0x1c2   :  { %949 = vmatpush3.xpose.msk.msra.mxu0 %vm603_vm5, %v584_v26 }
 0x1c5   :  { %951 = vmatmul.mubr.msk.f32.vlgmr.msra.gmra.mxu0 %vm603_vm5, %v600_v28 }
 0x285   :  { %v721_v30 = vpop.f32.mrf.mxu0 }
 0x286   :  { %v722_v31 = vadd.f32 %v721_v30, %v602_v27 }
 0x287   :  { %v952_v5 = vpop.f32.mrf.mxu0 }
 0x288   :  { %725 = vst [vmem:[#allocation3] sm:$0x1] %v722_v31 }
 0x289   :  { %970 = shalt.err (!%p967_p4)
}
 0x28a   :  { %735 = dma.vmem_to_hbm [thread:$0]  %s733_s20, 16, %s1287_s6, [#allocation4]  }
 0x28b   :  { %979 = dma.done.wait [#allocation4], 16  }
 0x28c   :  { %980 = vsyncadd [#allocation4], 4294967280 }
 0x28d   :  { %739 = vsyncpa [#allocation4], 1 }

</bundles_post_ra>
